<compile_context>
chip_gen: v5e
topology: v5e:2x2
jax: 0.10.0
libtpu: 0.0.40
codegen_flags: <defaults>
</compile_context>

<pallas_src>
import functools
import math

import jax
import jax.numpy as jnp
from jax.experimental import pallas as pl
from jax.experimental.pallas import tpu as pltpu


# --------------------------------------------------------------------------------------
# Target / generation detection
# --------------------------------------------------------------------------------------
@functools.lru_cache(maxsize=None)
def _tpu_target_info():
    """Return (num_tensorcores_per_chip, vmem_limit_bytes) for the current backend."""
    kind = ""
    try:
        kind = (jax.devices()[0].device_kind or "").lower()
    except Exception:
        pass
    is_v7 = ("v7" in kind) or ("7x" in kind)
    num_cores = 2 if is_v7 else 1                      # v5e/v6e: 1 TC/chip, v7x: 2 TC/chip
    vmem_bytes = (64 if is_v7 else 128) * 1024 * 1024  # physical VMEM per core
    try:
        vmem_bytes = int(pltpu.get_tpu_info().vmem_capacity_bytes)
    except Exception:
        pass
    # Leave headroom: ~100 MiB on v5e/v6e, ~48 MiB on v7x.
    vmem_limit = max(32 * 1024 * 1024, min(100 * 1024 * 1024, (vmem_bytes * 3) // 4))
    return num_cores, vmem_limit


# --------------------------------------------------------------------------------------
# Parameter preparation (do once at parameter-load time; constant-folds under jit)
# --------------------------------------------------------------------------------------
def prepare_attention_params(wq, wk, wv, wo, *, proj_size, compute_dtype=jnp.bfloat16):
    """Fold the full 1/sqrt(P) score scale into wq (the reference applies sqrt(scale) to both
    q and k -> identical product), fuse q/k/v weights into one (D, 3*H*P) matrix for the
    self-attention path, and cast everything to the MXU compute dtype."""
    scale = 1.0 / math.sqrt(proj_size)
    wq_s = wq * scale
    return {
        "wqkv": jnp.concatenate([wq_s, wk, wv], axis=1).astype(compute_dtype),
        "wq": wq_s.astype(compute_dtype),
        "wk": wk.astype(compute_dtype),
        "wv": wv.astype(compute_dtype),
        "wo": wo.astype(compute_dtype),
    }


# --------------------------------------------------------------------------------------
# Kernel helpers
# --------------------------------------------------------------------------------------
def _store_lane_dense_output(o_ref, out, *, bb, sq):
    """Pack out (bb*sq, D_out) f32 into the lane-dense slab block (1, bb, sq*D_out).

    D_out here is < 128, so a direct 3-D store would be all masked partial stores and a
    strided HBM DMA. The packing uses only leading-dim slices + lane/sublane concatenation
    (guaranteed Mosaic lowering); at production sizes (D_out >= 128) these concats are
    lane-tile-aligned copies."""
    d_out = out.shape[-1]
    slab = jnp.concatenate(
        [jnp.concatenate([out[b * sq + s: b * sq + s + 1, :] for s in range(sq)], axis=-1)
         for b in range(bb)],
        axis=0)                                     # (bb, sq*d_out)
    o_ref[0] = slab.astype(o_ref.dtype)


def _multi_head_attention(q2, k2, v2, wo, *, bb, sq, sk, n_heads, proj_size):
    """q2: (bb*sq, H*P), k2/v2: (bb*sk, H*P) in compute dtype; wo: (H*P, D_out).
    Returns (bb*sq, D_out) float32."""
    H, P = n_heads, proj_size

    def split_heads(x2, s):
        # (bb*s, H*P) -> (H*bb, s, P), batch index n = h*bb + b.
        # Static lane slices + stack; at production sizes (P a multiple of 128) the slices
        # are lane-tile-aligned views and the stack is a cheap tile gather.
        heads = [x2[:, h * P:(h + 1) * P] for h in range(H)]      # each (bb*s, P)
        return jnp.stack(heads, axis=0).reshape(H * bb, s, P)

    qh = split_heads(q2, sq)
    kh = split_heads(k2, sk)
    vh = split_heads(v2, sk)

    # Head-batched attention over the combined (head, batch) dim; softmax math in f32.
    scores = jnp.einsum('nqp,nkp->nqk', qh, kh, preferred_element_type=jnp.float32)
    m = jnp.max(scores, axis=-1, keepdims=True)
    e = jnp.exp(scores - m)
    l = jnp.sum(e, axis=-1, keepdims=True)
    # EUP reciprocal (approx): ~2^-12 relative error; use e / l for exact parity.
    p = (e * pl.reciprocal(l, approx=True)).astype(vh.dtype)
    ctx = jnp.einsum('nqk,nkp->nqp', p, vh, preferred_element_type=jnp.float32)

    # Re-pack heads onto lanes -> (bb*sq, H*P), then fold the head sum into a single
    # MXU pass over K = H*P against wo (no per-head matmuls + VPU head reduction).
    ctx_rows = jnp.concatenate(
        [ctx[h * bb:(h + 1) * bb].reshape(bb * sq, P) for h in range(H)], axis=-1)
    return jnp.dot(ctx_rows.astype(wo.dtype), wo, preferred_element_type=jnp.float32)


def _self_attention_kernel(x_ref, wqkv_ref, wo_ref, o_ref, *, n_heads, proj_size,
                           compute_dtype):
    # x_ref: (BB, S, D); wqkv_ref: (D, 3*H*P); wo_ref: (H*P, D_out); o_ref: (1, BB, S*D_out).
    bb, s, d = x_ref.shape
    hp = n_heads * proj_size
    rows = x_ref[...].reshape(bb * s, d).astype(compute_dtype)
    # Fused QKV projection: one MXU pass with 3*H*P output lanes, f32 accumulation.
    qkv = jnp.dot(rows, wqkv_ref[...], preferred_element_type=jnp.float32).astype(compute_dtype)
    q2, k2, v2 = qkv[:, :hp], qkv[:, hp:2 * hp], qkv[:, 2 * hp:]
    out = _multi_head_attention(q2, k2, v2, wo_ref[...], bb=bb, sq=s, sk=s,
                                n_heads=n_heads, proj_size=proj_size)
    _store_lane_dense_output(o_ref, out, bb=bb, sq=s)


def _cross_attention_kernel(q_ref, k_ref, v_ref, wq_ref, wk_ref, wv_ref, wo_ref, o_ref,
                            *, n_heads, proj_size, compute_dtype):
    # Distinct q/k/v sources: three projections against three separate weight operands.
    bb, sq, d = q_ref.shape
    sk = k_ref.shape[1]
    q_rows = q_ref[...].reshape(bb * sq, d).astype(compute_dtype)
    k_rows = k_ref[...].reshape(bb * sk, d).astype(compute_dtype)
    v_rows = v_ref[...].reshape(bb * sk, d).astype(compute_dtype)
    q2 = jnp.dot(q_rows, wq_ref[...], preferred_element_type=jnp.float32).astype(compute_dtype)
    k2 = jnp.dot(k_rows, wk_ref[...], preferred_element_type=jnp.float32).astype(compute_dtype)
    v2 = jnp.dot(v_rows, wv_ref[...], preferred_element_type=jnp.float32).astype(compute_dtype)
    out = _multi_head_attention(q2, k2, v2, wo_ref[...], bb=bb, sq=sq, sk=sk,
                                n_heads=n_heads, proj_size=proj_size)
    _store_lane_dense_output(o_ref, out, bb=bb, sq=sq)


# --------------------------------------------------------------------------------------
# Wrapper
# --------------------------------------------------------------------------------------
def attention_core(q_src, k_src, v_src, params, *, n_heads, proj_size,
                   num_batch_blocks=None, fused_qkv=None):
    B, Sq, D = q_src.shape
    Sk = k_src.shape[1]
    HP = n_heads * proj_size
    wqkv, wo = params["wqkv"], params["wo"]
    D_out = wo.shape[1]
    compute_dtype = wqkv.dtype

    num_cores, vmem_limit = _tpu_target_info()
    if num_batch_blocks is None:
        # NB=1 on v5e/v6e (serial grid, maximize MXU row fill); NB=2 on v7x (2 TCs).
        num_batch_blocks = num_cores if (B % num_cores == 0) else 1
    NB = num_batch_blocks
    assert B % NB == 0, "batch must divide evenly into batch blocks"
    BB = B // NB

    # Dispatch: fused single-QKV-matmul path for self-attention. Object identity is fragile
    # under jit; callers can force the path with fused_qkv=True/False.
    if fused_qkv is None:
        fused_qkv = (q_src is k_src) and (k_src is v_src)

    out_struct = jax.ShapeDtypeStruct((NB, BB, Sq * D_out), q_src.dtype)
    out_spec = pl.BlockSpec((1, BB, Sq * D_out), lambda b: (b, 0, 0))

    def build_and_run(single_buffer_weights):
        if single_buffer_weights:
            def wspec(shape):
                # Weights never change block index -> a second pipeline buffer is pure
                # VMEM waste (matters most on v7x's 64 MiB and at real D).
                return pl.BlockSpec(shape, lambda b, _n=len(shape): (0,) * _n,
                                    pipeline_mode=pl.Buffered(1))
        else:
            def wspec(shape):
                return pl.BlockSpec(shape, lambda b, _n=len(shape): (0,) * _n)

        wo_spec = wspec((HP, D_out))
        if fused_qkv:
            kernel = functools.partial(_self_attention_kernel, n_heads=n_heads,
                                       proj_size=proj_size, compute_dtype=compute_dtype)
            in_specs = [pl.BlockSpec((BB, Sq, D), lambda b: (b, 0, 0)),
                        wspec((D, 3 * HP)), wo_spec]
            operands = (q_src, wqkv, wo)
        else:
            kernel = functools.partial(_cross_attention_kernel, n_heads=n_heads,
                                       proj_size=proj_size, compute_dtype=compute_dtype)
            in_specs = [pl.BlockSpec((BB, Sq, D), lambda b: (b, 0, 0)),
                        pl.BlockSpec((BB, Sk, D), lambda b: (b, 0, 0)),
                        pl.BlockSpec((BB, Sk, D), lambda b: (b, 0, 0)),
                        wspec((D, HP)), wspec((D, HP)), wspec((D, HP)), wo_spec]
            operands = (q_src, k_src, v_src, params["wq"], params["wk"], params["wv"], wo)

        return pl.pallas_call(
            kernel,
            out_shape=out_struct,
            grid_spec=pltpu.PrefetchScalarGridSpec(
                num_scalar_prefetch=0,
                grid=(NB,),
                in_specs=in_specs,
                out_specs=out_spec),
            compiler_params=pltpu.CompilerParams(
                dimension_semantics=("parallel",),
                vmem_limit_bytes=vmem_limit),
        )(*operands)

    try:
        out_slab = build_and_run(True)
    except Exception:
        # Older Pallas without per-BlockSpec pipeline_mode support: fall back to the
        # default double-buffered weights.
        out_slab = build_and_run(False)

    # Lane-dense slab (NB, BB, Sq*D_out) -> (B, Sq, D_out) (XLA-level reshape, free).
    return out_slab.reshape(B, Sq, D_out)


# --------------------------------------------------------------------------------------
# Pure-JAX reference (mirrors the PyTorch forward: mask=None, kv_cache=None, f32 throughout)
# --------------------------------------------------------------------------------------
def attention_core_ref(q_src, k_src, v_src, wq, wk, wv, wo, *, n_heads, proj_size):
    B, Sq, _ = q_src.shape
    Sk = k_src.shape[1]
    qk_scale = (1.0 / math.sqrt(proj_size)) ** 0.5
    q = (q_src @ wq) * qk_scale
    k = (k_src @ wk) * qk_scale
    v = v_src @ wv

    def to_heads(x, S):
        return x.reshape(B, S, n_heads, proj_size).transpose(0, 2, 1, 3)   # (B,H,S,P)

    qh, kh, vh = to_heads(q, Sq), to_heads(k, Sk), to_heads(v, Sk)
    scores = jnp.einsum('bhqd,bhkd->bhqk', qh, kh)
    p = jax.nn.softmax(scores, axis=-1)
    ctx = jnp.einsum('bhqk,bhkd->bhqd', p, vh)
    ctx = ctx.transpose(0, 2, 1, 3).reshape(B, Sq, n_heads * proj_size)
    return ctx @ wo


if __name__ == "__main__":
    # Shapes consistent with the module: state_size=32, n_heads=2 -> proj=16.
    B, Sq, Sk, D = 2, 8, 8, 32
    n_heads = 2
    proj = D // n_heads
    HP = n_heads * proj

    key = jax.random.PRNGKey(0)
    k0, k1, k2, k3, k4, k5, k6, k7 = jax.random.split(key, 8)
    lim_in = 1.0 / math.sqrt(D)
    lim_out = 1.0 / math.sqrt(HP)
    wq = jax.random.uniform(k3, (D, HP), jnp.float32, -lim_in, lim_in)
    wk = jax.random.uniform(k4, (D, HP), jnp.float32, -lim_in, lim_in)
    wv = jax.random.uniform(k5, (D, HP), jnp.float32, -lim_in, lim_in)
    wo = jax.random.uniform(k6, (HP, D), jnp.float32, -lim_out, lim_out)

    params = prepare_attention_params(wq, wk, wv, wo, proj_size=proj)

    # Tolerance covers bf16 MXU operands + the approximate EUP reciprocal.
    atol = rtol = 2e-2

    # Path 1: self-attention (shared source) -> fused single QKV projection matmul.
    x = jax.random.normal(k0, (B, Sq, D), jnp.float32)
    out_self = attention_core(x, x, x, params, n_heads=n_heads, proj_size=proj)
    out_self = jax.block_until_ready(out_self)
    ref_self = attention_core_ref(x, x, x, wq, wk, wv, wo, n_heads=n_heads, proj_size=proj)
    assert out_self.shape == (B, Sq, D)
    assert jnp.allclose(out_self, ref_self, atol=atol, rtol=rtol), "self-attention mismatch"

    # Path 2: distinct q/k/v sources -> general kernel with separate weight operands.
    q_src = jax.random.normal(k1, (B, Sq, D), jnp.float32)
    k_src = jax.random.normal(k2, (B, Sk, D), jnp.float32)
    v_src = jax.random.normal(k7, (B, Sk, D), jnp.float32)
    out_x = attention_core(q_src, k_src, v_src, params, n_heads=n_heads, proj_size=proj)
    out_x = jax.block_until_ready(out_x)
    ref_x = attention_core_ref(q_src, k_src, v_src, wq, wk, wv, wo,
                               n_heads=n_heads, proj_size=proj)
    assert out_x.shape == (B, Sq, D)
    assert jnp.allclose(out_x, ref_x, atol=atol, rtol=rtol), "cross-attention mismatch"

    print("KERNEL_OK")
</pallas_src>

<mosaic_0001>
module attributes {stable_mosaic.version = 11 : i64} {
  func.func @_self_attention_kernel(%arg0: i32, %arg1: memref<2x8x32xf32, #tpu.memory_space<vmem>>, %arg2: memref<32x96xbf16, #tpu.memory_space<vmem>>, %arg3: memref<32x32xbf16, #tpu.memory_space<vmem>>, %arg4: memref<1x2x256xf32, #tpu.memory_space<vmem>>) attributes {dimension_semantics = [#tpu.dimension_semantics<parallel>], iteration_bounds = array<i64: 1>, scalar_prefetch = 0 : i64, scratch_operands = 0 : i64, tpu.core_type = #tpu.core_type<tc>, window_params = [{transform_indices = @transform_0, window_bounds = array<i64: 2, 8, 32>}, {pipeline_mode = #tpu.pipeline_mode<synchronous>, transform_indices = @transform_1, window_bounds = array<i64: 32, 96>}, {pipeline_mode = #tpu.pipeline_mode<synchronous>, transform_indices = @transform_2, window_bounds = array<i64: 32, 32>}, {transform_indices = @transform_3, window_bounds = array<i64: 1, 2, 256>}]} {
    %c0 = arith.constant 0 : index
    %c0_0 = arith.constant 0 : index
    %c0_1 = arith.constant 0 : index
    %0 = vector.load %arg1[%c0, %c0_0, %c0_1] : memref<2x8x32xf32, #tpu.memory_space<vmem>>, vector<2x8x32xf32>
    %1 = vector.shape_cast %0 : vector<2x8x32xf32> to vector<16x32xf32>
    %2 = arith.truncf %1 : vector<16x32xf32> to vector<16x32xbf16>
    %c0_2 = arith.constant 0 : index
    %c0_3 = arith.constant 0 : index
    %3 = vector.load %arg2[%c0_2, %c0_3] : memref<32x96xbf16, #tpu.memory_space<vmem>>, vector<32x96xbf16>
    %cst = arith.constant dense<0.000000e+00> : vector<16x96xf32>
    %4 = tpu.matmul %2, %3, %cst {dimension_numbers = #tpu.dot_dimension_numbers<[1], [0], [0], [1], [0, 0, 1, 1], [], []>} : vector<16x32xbf16>, vector<32x96xbf16>, vector<16x96xf32> -> vector<16x96xf32>
    %5 = arith.truncf %4 : vector<16x96xf32> to vector<16x96xbf16>
    %6 = vector.extract_strided_slice %5 {offsets = [0, 0], sizes = [16, 32], strides = [1, 1]} : vector<16x96xbf16> to vector<16x32xbf16>
    %7 = vector.extract_strided_slice %5 {offsets = [0, 32], sizes = [16, 32], strides = [1, 1]} : vector<16x96xbf16> to vector<16x32xbf16>
    %8 = vector.extract_strided_slice %5 {offsets = [0, 64], sizes = [16, 32], strides = [1, 1]} : vector<16x96xbf16> to vector<16x32xbf16>
    %c0_4 = arith.constant 0 : index
    %c0_5 = arith.constant 0 : index
    %9 = vector.load %arg3[%c0_4, %c0_5] : memref<32x32xbf16, #tpu.memory_space<vmem>>, vector<32x32xbf16>
    %10 = vector.extract_strided_slice %6 {offsets = [0, 0], sizes = [16, 16], strides = [1, 1]} : vector<16x32xbf16> to vector<16x16xbf16>
    %11 = vector.extract_strided_slice %6 {offsets = [0, 16], sizes = [16, 16], strides = [1, 1]} : vector<16x32xbf16> to vector<16x16xbf16>
    %12 = vector.shape_cast %10 : vector<16x16xbf16> to vector<1x16x16xbf16>
    %13 = vector.shape_cast %11 : vector<16x16xbf16> to vector<1x16x16xbf16>
    %14 = tpu.concatenate %12, %13 in 0 : vector<1x16x16xbf16>, vector<1x16x16xbf16> -> vector<2x16x16xbf16>
    %15 = vector.shape_cast %14 : vector<2x16x16xbf16> to vector<4x8x16xbf16>
    %16 = vector.extract_strided_slice %7 {offsets = [0, 0], sizes = [16, 16], strides = [1, 1]} : vector<16x32xbf16> to vector<16x16xbf16>
    %17 = vector.extract_strided_slice %7 {offsets = [0, 16], sizes = [16, 16], strides = [1, 1]} : vector<16x32xbf16> to vector<16x16xbf16>
    %18 = vector.shape_cast %16 : vector<16x16xbf16> to vector<1x16x16xbf16>
    %19 = vector.shape_cast %17 : vector<16x16xbf16> to vector<1x16x16xbf16>
    %20 = tpu.concatenate %18, %19 in 0 : vector<1x16x16xbf16>, vector<1x16x16xbf16> -> vector<2x16x16xbf16>
    %21 = vector.shape_cast %20 : vector<2x16x16xbf16> to vector<4x8x16xbf16>
    %22 = vector.extract_strided_slice %8 {offsets = [0, 0], sizes = [16, 16], strides = [1, 1]} : vector<16x32xbf16> to vector<16x16xbf16>
    %23 = vector.extract_strided_slice %8 {offsets = [0, 16], sizes = [16, 16], strides = [1, 1]} : vector<16x32xbf16> to vector<16x16xbf16>
    %24 = vector.shape_cast %22 : vector<16x16xbf16> to vector<1x16x16xbf16>
    %25 = vector.shape_cast %23 : vector<16x16xbf16> to vector<1x16x16xbf16>
    %26 = tpu.concatenate %24, %25 in 0 : vector<1x16x16xbf16>, vector<1x16x16xbf16> -> vector<2x16x16xbf16>
    %27 = vector.shape_cast %26 : vector<2x16x16xbf16> to vector<4x8x16xbf16>
    "tpu.trace_start"() <{level = 10 : i32, message = "nqp,nkp->nqk"}> : () -> ()
    %cst_6 = arith.constant dense<0.000000e+00> : vector<4x8x8xf32>
    %28 = tpu.matmul %15, %21, %cst_6 {dimension_numbers = #tpu.dot_dimension_numbers<[2], [2], [1], [1], [0, 0, 0, 1, 1, 1], [0], [0]>} : vector<4x8x16xbf16>, vector<4x8x16xbf16>, vector<4x8x8xf32> -> vector<4x8x8xf32>
    "tpu.trace_stop"() : () -> ()
    %cst_7 = arith.constant dense<0xFF800000> : vector<4x8xf32>
    %29 = vector.multi_reduction <maximumf>, %28, %cst_7 [2] : vector<4x8x8xf32> to vector<4x8xf32>
    %30 = vector.shape_cast %29 : vector<4x8xf32> to vector<4x8x1xf32>
    %31 = vector.broadcast %30 : vector<4x8x1xf32> to vector<4x8x8xf32>
    %32 = arith.subf %28, %31 : vector<4x8x8xf32>
    %33 = math.exp %32 : vector<4x8x8xf32>
    %cst_8 = arith.constant dense<0.000000e+00> : vector<4x8xf32>
    %34 = vector.multi_reduction <add>, %33, %cst_8 [2] : vector<4x8x8xf32> to vector<4x8xf32>
    %35 = vector.shape_cast %34 : vector<4x8xf32> to vector<4x8x1xf32>
    %36 = tpu.reciprocal %35 {approx = true} : vector<4x8x1xf32> -> vector<4x8x1xf32>
    %37 = vector.broadcast %36 : vector<4x8x1xf32> to vector<4x8x8xf32>
    %38 = arith.mulf %33, %37 : vector<4x8x8xf32>
    %39 = arith.truncf %38 : vector<4x8x8xf32> to vector<4x8x8xbf16>
    "tpu.trace_start"() <{level = 10 : i32, message = "nqk,nkp->nqp"}> : () -> ()
    %cst_9 = arith.constant dense<0.000000e+00> : vector<4x8x16xf32>
    %40 = tpu.matmul %39, %27, %cst_9 {dimension_numbers = #tpu.dot_dimension_numbers<[2], [1], [1], [2], [0, 0, 0, 1, 1, 2], [0], [0]>} : vector<4x8x8xbf16>, vector<4x8x16xbf16>, vector<4x8x16xf32> -> vector<4x8x16xf32>
    "tpu.trace_stop"() : () -> ()
    %41 = vector.extract_strided_slice %40 {offsets = [0, 0, 0], sizes = [2, 8, 16], strides = [1, 1, 1]} : vector<4x8x16xf32> to vector<2x8x16xf32>
    %42 = vector.shape_cast %41 : vector<2x8x16xf32> to vector<16x16xf32>
    %43 = vector.extract_strided_slice %40 {offsets = [2, 0, 0], sizes = [2, 8, 16], strides = [1, 1, 1]} : vector<4x8x16xf32> to vector<2x8x16xf32>
    %44 = vector.shape_cast %43 : vector<2x8x16xf32> to vector<16x16xf32>
    %45 = tpu.concatenate %42, %44 in 1 : vector<16x16xf32>, vector<16x16xf32> -> vector<16x32xf32>
    %46 = arith.truncf %45 : vector<16x32xf32> to vector<16x32xbf16>
    %cst_10 = arith.constant dense<0.000000e+00> : vector<16x32xf32>
    %47 = tpu.matmul %46, %9, %cst_10 {dimension_numbers = #tpu.dot_dimension_numbers<[1], [0], [0], [1], [0, 0, 1, 1], [], []>} : vector<16x32xbf16>, vector<32x32xbf16>, vector<16x32xf32> -> vector<16x32xf32>
    %48 = vector.extract_strided_slice %47 {offsets = [0, 0], sizes = [1, 32], strides = [1, 1]} : vector<16x32xf32> to vector<1x32xf32>
    %49 = vector.extract_strided_slice %47 {offsets = [1, 0], sizes = [1, 32], strides = [1, 1]} : vector<16x32xf32> to vector<1x32xf32>
    %50 = vector.extract_strided_slice %47 {offsets = [2, 0], sizes = [1, 32], strides = [1, 1]} : vector<16x32xf32> to vector<1x32xf32>
    %51 = vector.extract_strided_slice %47 {offsets = [3, 0], sizes = [1, 32], strides = [1, 1]} : vector<16x32xf32> to vector<1x32xf32>
    %52 = vector.extract_strided_slice %47 {offsets = [4, 0], sizes = [1, 32], strides = [1, 1]} : vector<16x32xf32> to vector<1x32xf32>
    %53 = vector.extract_strided_slice %47 {offsets = [5, 0], sizes = [1, 32], strides = [1, 1]} : vector<16x32xf32> to vector<1x32xf32>
    %54 = vector.extract_strided_slice %47 {offsets = [6, 0], sizes = [1, 32], strides = [1, 1]} : vector<16x32xf32> to vector<1x32xf32>
    %55 = vector.extract_strided_slice %47 {offsets = [7, 0], sizes = [1, 32], strides = [1, 1]} : vector<16x32xf32> to vector<1x32xf32>
    %56 = tpu.concatenate %48, %49, %50, %51, %52, %53, %54, %55 in 1 : vector<1x32xf32>, vector<1x32xf32>, vector<1x32xf32>, vector<1x32xf32>, vector<1x32xf32>, vector<1x32xf32>, vector<1x32xf32>, vector<1x32xf32> -> vector<1x256xf32>
    %57 = vector.extract_strided_slice %47 {offsets = [8, 0], sizes = [1, 32], strides = [1, 1]} : vector<16x32xf32> to vector<1x32xf32>
    %58 = vector.extract_strided_slice %47 {offsets = [9, 0], sizes = [1, 32], strides = [1, 1]} : vector<16x32xf32> to vector<1x32xf32>
    %59 = vector.extract_strided_slice %47 {offsets = [10, 0], sizes = [1, 32], strides = [1, 1]} : vector<16x32xf32> to vector<1x32xf32>
    %60 = vector.extract_strided_slice %47 {offsets = [11, 0], sizes = [1, 32], strides = [1, 1]} : vector<16x32xf32> to vector<1x32xf32>
    %61 = vector.extract_strided_slice %47 {offsets = [12, 0], sizes = [1, 32], strides = [1, 1]} : vector<16x32xf32> to vector<1x32xf32>
    %62 = vector.extract_strided_slice %47 {offsets = [13, 0], sizes = [1, 32], strides = [1, 1]} : vector<16x32xf32> to vector<1x32xf32>
    %63 = vector.extract_strided_slice %47 {offsets = [14, 0], sizes = [1, 32], strides = [1, 1]} : vector<16x32xf32> to vector<1x32xf32>
    %64 = vector.extract_strided_slice %47 {offsets = [15, 0], sizes = [1, 32], strides = [1, 1]} : vector<16x32xf32> to vector<1x32xf32>
    %65 = tpu.concatenate %57, %58, %59, %60, %61, %62, %63, %64 in 1 : vector<1x32xf32>, vector<1x32xf32>, vector<1x32xf32>, vector<1x32xf32>, vector<1x32xf32>, vector<1x32xf32>, vector<1x32xf32>, vector<1x32xf32> -> vector<1x256xf32>
    %66 = tpu.concatenate %56, %65 in 0 : vector<1x256xf32>, vector<1x256xf32> -> vector<2x256xf32>
    %c0_11 = arith.constant 0 : index
    %c0_12 = arith.constant 0 : index
    %c0_13 = arith.constant 0 : index
    %67 = vector.load %arg4[%c0_11, %c0_12, %c0_13] : memref<1x2x256xf32, #tpu.memory_space<vmem>>, vector<1x2x256xf32>
    %68 = vector.shape_cast %67 : vector<1x2x256xf32> to vector<2x256xf32>
    %69 = vector.shape_cast %66 : vector<2x256xf32> to vector<1x2x256xf32>
    tpu.vector_store %arg4[%c0_11, %c0_12, %c0_13], %69 {strides = array<i32>} : memref<1x2x256xf32, #tpu.memory_space<vmem>>, vector<1x2x256xf32>,
    return
  }
  func.func @transform_0(%arg0: i32) -> (i32, i32, i32) {
    %c0_i32 = arith.constant 0 : i32
    %c0_i32_0 = arith.constant 0 : i32
    %c0_i32_1 = arith.constant 0 : i32
    return %arg0, %c0_i32, %c0_i32_0 : i32, i32, i32
  }
  func.func @transform_1(%arg0: i32) -> (i32, i32) {
    %c0_i32 = arith.constant 0 : i32
    %c0_i32_0 = arith.constant 0 : i32
    %c0_i32_1 = arith.constant 0 : i32
    return %c0_i32, %c0_i32_0 : i32, i32
  }
  func.func @transform_2(%arg0: i32) -> (i32, i32) {
    %c0_i32 = arith.constant 0 : i32
    %c0_i32_0 = arith.constant 0 : i32
    %c0_i32_1 = arith.constant 0 : i32
    return %c0_i32, %c0_i32_0 : i32, i32
  }
  func.func @transform_3(%arg0: i32) -> (i32, i32, i32) {
    %c0_i32 = arith.constant 0 : i32
    %c0_i32_0 = arith.constant 0 : i32
    %c0_i32_1 = arith.constant 0 : i32
    return %arg0, %c0_i32, %c0_i32_0 : i32, i32, i32
  }
}

module attributes {stable_mosaic.version = 11 : i64} {
  func.func @_self_attention_kernel(%arg0: i32, %arg1: memref<2x8x32xf32, #tpu.memory_space<vmem>>, %arg2: memref<32x96xbf16, #tpu.memory_space<vmem>>, %arg3: memref<32x32xbf16, #tpu.memory_space<vmem>>, %arg4: memref<1x2x256xf32, #tpu.memory_space<vmem>>) attributes {dimension_semantics = [#tpu.dimension_semantics<parallel>], iteration_bounds = array<i64: 1>, scalar_prefetch = 0 : i64, scratch_operands = 0 : i64, tpu.core_type = #tpu.core_type<tc>, window_params = [{transform_indices = @transform_0, window_bounds = array<i64: 2, 8, 32>}, {pipeline_mode = #tpu.pipeline_mode<synchronous>, transform_indices = @transform_1, window_bounds = array<i64: 32, 96>}, {pipeline_mode = #tpu.pipeline_mode<synchronous>, transform_indices = @transform_2, window_bounds = array<i64: 32, 32>}, {transform_indices = @transform_3, window_bounds = array<i64: 1, 2, 256>}]} {
    %c0 = arith.constant 0 : index
    %c0_0 = arith.constant 0 : index
    %c0_1 = arith.constant 0 : index
    %0 = vector.load %arg1[%c0, %c0_0, %c0_1] : memref<2x8x32xf32, #tpu.memory_space<vmem>>, vector<2x8x32xf32>
    %1 = vector.shape_cast %0 : vector<2x8x32xf32> to vector<16x32xf32>
    %2 = arith.truncf %1 : vector<16x32xf32> to vector<16x32xbf16>
    %c0_2 = arith.constant 0 : index
    %c0_3 = arith.constant 0 : index
    %3 = vector.load %arg2[%c0_2, %c0_3] : memref<32x96xbf16, #tpu.memory_space<vmem>>, vector<32x96xbf16>
    %cst = arith.constant dense<0.000000e+00> : vector<16x96xf32>
    %4 = tpu.matmul %2, %3, %cst {dimension_numbers = #tpu.dot_dimension_numbers<[1], [0], [0], [1], [0, 0, 1, 1], [], []>} : vector<16x32xbf16>, vector<32x96xbf16>, vector<16x96xf32> -> vector<16x96xf32>
    %5 = arith.truncf %4 : vector<16x96xf32> to vector<16x96xbf16>
    %6 = vector.extract_strided_slice %5 {offsets = [0, 0], sizes = [16, 32], strides = [1, 1]} : vector<16x96xbf16> to vector<16x32xbf16>
    %7 = vector.extract_strided_slice %5 {offsets = [0, 32], sizes = [16, 32], strides = [1, 1]} : vector<16x96xbf16> to vector<16x32xbf16>
    %8 = vector.extract_strided_slice %5 {offsets = [0, 64], sizes = [16, 32], strides = [1, 1]} : vector<16x96xbf16> to vector<16x32xbf16>
    %c0_4 = arith.constant 0 : index
    %c0_5 = arith.constant 0 : index
    %9 = vector.load %arg3[%c0_4, %c0_5] : memref<32x32xbf16, #tpu.memory_space<vmem>>, vector<32x32xbf16>
    %10 = vector.extract_strided_slice %6 {offsets = [0, 0], sizes = [16, 16], strides = [1, 1]} : vector<16x32xbf16> to vector<16x16xbf16>
    %11 = vector.extract_strided_slice %6 {offsets = [0, 16], sizes = [16, 16], strides = [1, 1]} : vector<16x32xbf16> to vector<16x16xbf16>
    %12 = vector.shape_cast %10 : vector<16x16xbf16> to vector<1x16x16xbf16>
    %13 = vector.shape_cast %11 : vector<16x16xbf16> to vector<1x16x16xbf16>
    %14 = tpu.concatenate %12, %13 in 0 : vector<1x16x16xbf16>, vector<1x16x16xbf16> -> vector<2x16x16xbf16>
    %15 = vector.shape_cast %14 : vector<2x16x16xbf16> to vector<4x8x16xbf16>
    %16 = vector.extract_strided_slice %7 {offsets = [0, 0], sizes = [16, 16], strides = [1, 1]} : vector<16x32xbf16> to vector<16x16xbf16>
    %17 = vector.extract_strided_slice %7 {offsets = [0, 16], sizes = [16, 16], strides = [1, 1]} : vector<16x32xbf16> to vector<16x16xbf16>
    %18 = vector.shape_cast %16 : vector<16x16xbf16> to vector<1x16x16xbf16>
    %19 = vector.shape_cast %17 : vector<16x16xbf16> to vector<1x16x16xbf16>
    %20 = tpu.concatenate %18, %19 in 0 : vector<1x16x16xbf16>, vector<1x16x16xbf16> -> vector<2x16x16xbf16>
    %21 = vector.shape_cast %20 : vector<2x16x16xbf16> to vector<4x8x16xbf16>
    %22 = vector.extract_strided_slice %8 {offsets = [0, 0], sizes = [16, 16], strides = [1, 1]} : vector<16x32xbf16> to vector<16x16xbf16>
    %23 = vector.extract_strided_slice %8 {offsets = [0, 16], sizes = [16, 16], strides = [1, 1]} : vector<16x32xbf16> to vector<16x16xbf16>
    %24 = vector.shape_cast %22 : vector<16x16xbf16> to vector<1x16x16xbf16>
    %25 = vector.shape_cast %23 : vector<16x16xbf16> to vector<1x16x16xbf16>
    %26 = tpu.concatenate %24, %25 in 0 : vector<1x16x16xbf16>, vector<1x16x16xbf16> -> vector<2x16x16xbf16>
    %27 = vector.shape_cast %26 : vector<2x16x16xbf16> to vector<4x8x16xbf16>
    "tpu.trace_start"() <{level = 10 : i32, message = "nqp,nkp->nqk"}> : () -> ()
    %cst_6 = arith.constant dense<0.000000e+00> : vector<4x8x8xf32>
    %28 = tpu.matmul %15, %21, %cst_6 {dimension_numbers = #tpu.dot_dimension_numbers<[2], [2], [1], [1], [0, 0, 0, 1, 1, 1], [0], [0]>} : vector<4x8x16xbf16>, vector<4x8x16xbf16>, vector<4x8x8xf32> -> vector<4x8x8xf32>
    "tpu.trace_stop"() : () -> ()
    %cst_7 = arith.constant dense<0xFF800000> : vector<4x8xf32>
    %29 = vector.multi_reduction <maximumf>, %28, %cst_7 [2] : vector<4x8x8xf32> to vector<4x8xf32>
    %30 = vector.shape_cast %29 : vector<4x8xf32> to vector<4x8x1xf32>
    %31 = vector.broadcast %30 : vector<4x8x1xf32> to vector<4x8x8xf32>
    %32 = arith.subf %28, %31 : vector<4x8x8xf32>
    %33 = math.exp %32 : vector<4x8x8xf32>
    %cst_8 = arith.constant dense<0.000000e+00> : vector<4x8xf32>
    %34 = vector.multi_reduction <add>, %33, %cst_8 [2] : vector<4x8x8xf32> to vector<4x8xf32>
    %35 = vector.shape_cast %34 : vector<4x8xf32> to vector<4x8x1xf32>
    %36 = tpu.reciprocal %35 {approx = true} : vector<4x8x1xf32> -> vector<4x8x1xf32>
    %37 = vector.broadcast %36 : vector<4x8x1xf32> to vector<4x8x8xf32>
    %38 = arith.mulf %33, %37 : vector<4x8x8xf32>
    %39 = arith.truncf %38 : vector<4x8x8xf32> to vector<4x8x8xbf16>
    "tpu.trace_start"() <{level = 10 : i32, message = "nqk,nkp->nqp"}> : () -> ()
    %cst_9 = arith.constant dense<0.000000e+00> : vector<4x8x16xf32>
    %40 = tpu.matmul %39, %27, %cst_9 {dimension_numbers = #tpu.dot_dimension_numbers<[2], [1], [1], [2], [0, 0, 0, 1, 1, 2], [0], [0]>} : vector<4x8x8xbf16>, vector<4x8x16xbf16>, vector<4x8x16xf32> -> vector<4x8x16xf32>
    "tpu.trace_stop"() : () -> ()
    %41 = vector.extract_strided_slice %40 {offsets = [0, 0, 0], sizes = [2, 8, 16], strides = [1, 1, 1]} : vector<4x8x16xf32> to vector<2x8x16xf32>
    %42 = vector.shape_cast %41 : vector<2x8x16xf32> to vector<16x16xf32>
    %43 = vector.extract_strided_slice %40 {offsets = [2, 0, 0], sizes = [2, 8, 16], strides = [1, 1, 1]} : vector<4x8x16xf32> to vector<2x8x16xf32>
    %44 = vector.shape_cast %43 : vector<2x8x16xf32> to vector<16x16xf32>
    %45 = tpu.concatenate %42, %44 in 1 : vector<16x16xf32>, vector<16x16xf32> -> vector<16x32xf32>
    %46 = arith.truncf %45 : vector<16x32xf32> to vector<16x32xbf16>
    %cst_10 = arith.constant dense<0.000000e+00> : vector<16x32xf32>
    %47 = tpu.matmul %46, %9, %cst_10 {dimension_numbers = #tpu.dot_dimension_numbers<[1], [0], [0], [1], [0, 0, 1, 1], [], []>} : vector<16x32xbf16>, vector<32x32xbf16>, vector<16x32xf32> -> vector<16x32xf32>
    %48 = vector.extract_strided_slice %47 {offsets = [0, 0], sizes = [1, 32], strides = [1, 1]} : vector<16x32xf32> to vector<1x32xf32>
    %49 = vector.extract_strided_slice %47 {offsets = [1, 0], sizes = [1, 32], strides = [1, 1]} : vector<16x32xf32> to vector<1x32xf32>
    %50 = vector.extract_strided_slice %47 {offsets = [2, 0], sizes = [1, 32], strides = [1, 1]} : vector<16x32xf32> to vector<1x32xf32>
    %51 = vector.extract_strided_slice %47 {offsets = [3, 0], sizes = [1, 32], strides = [1, 1]} : vector<16x32xf32> to vector<1x32xf32>
    %52 = vector.extract_strided_slice %47 {offsets = [4, 0], sizes = [1, 32], strides = [1, 1]} : vector<16x32xf32> to vector<1x32xf32>
    %53 = vector.extract_strided_slice %47 {offsets = [5, 0], sizes = [1, 32], strides = [1, 1]} : vector<16x32xf32> to vector<1x32xf32>
    %54 = vector.extract_strided_slice %47 {offsets = [6, 0], sizes = [1, 32], strides = [1, 1]} : vector<16x32xf32> to vector<1x32xf32>
    %55 = vector.extract_strided_slice %47 {offsets = [7, 0], sizes = [1, 32], strides = [1, 1]} : vector<16x32xf32> to vector<1x32xf32>
    %56 = tpu.concatenate %48, %49, %50, %51, %52, %53, %54, %55 in 1 : vector<1x32xf32>, vector<1x32xf32>, vector<1x32xf32>, vector<1x32xf32>, vector<1x32xf32>, vector<1x32xf32>, vector<1x32xf32>, vector<1x32xf32> -> vector<1x256xf32>
    %57 = vector.extract_strided_slice %47 {offsets = [8, 0], sizes = [1, 32], strides = [1, 1]} : vector<16x32xf32> to vector<1x32xf32>
    %58 = vector.extract_strided_slice %47 {offsets = [9, 0], sizes = [1, 32], strides = [1, 1]} : vector<16x32xf32> to vector<1x32xf32>
    %59 = vector.extract_strided_slice %47 {offsets = [10, 0], sizes = [1, 32], strides = [1, 1]} : vector<16x32xf32> to vector<1x32xf32>
    %60 = vector.extract_strided_slice %47 {offsets = [11, 0], sizes = [1, 32], strides = [1, 1]} : vector<16x32xf32> to vector<1x32xf32>
    %61 = vector.extract_strided_slice %47 {offsets = [12, 0], sizes = [1, 32], strides = [1, 1]} : vector<16x32xf32> to vector<1x32xf32>
    %62 = vector.extract_strided_slice %47 {offsets = [13, 0], sizes = [1, 32], strides = [1, 1]} : vector<16x32xf32> to vector<1x32xf32>
    %63 = vector.extract_strided_slice %47 {offsets = [14, 0], sizes = [1, 32], strides = [1, 1]} : vector<16x32xf32> to vector<1x32xf32>
    %64 = vector.extract_strided_slice %47 {offsets = [15, 0], sizes = [1, 32], strides = [1, 1]} : vector<16x32xf32> to vector<1x32xf32>
    %65 = tpu.concatenate %57, %58, %59, %60, %61, %62, %63, %64 in 1 : vector<1x32xf32>, vector<1x32xf32>, vector<1x32xf32>, vector<1x32xf32>, vector<1x32xf32>, vector<1x32xf32>, vector<1x32xf32>, vector<1x32xf32> -> vector<1x256xf32>
    %66 = tpu.concatenate %56, %65 in 0 : vector<1x256xf32>, vector<1x256xf32> -> vector<2x256xf32>
    %c0_11 = arith.constant 0 : index
    %c0_12 = arith.constant 0 : index
    %c0_13 = arith.constant 0 : index
    %67 = vector.load %arg4[%c0_11, %c0_12, %c0_13] : memref<1x2x256xf32, #tpu.memory_space<vmem>>, vector<1x2x256xf32>
    %68 = vector.shape_cast %67 : vector<1x2x256xf32> to vector<2x256xf32>
    %69 = vector.shape_cast %66 : vector<2x256xf32> to vector<1x2x256xf32>
    tpu.vector_store %arg4[%c0_11, %c0_12, %c0_13], %69 {strides = array<i32>} : memref<1x2x256xf32, #tpu.memory_space<vmem>>, vector<1x2x256xf32>,
    return
  }
  func.func @transform_0(%arg0: i32) -> (i32, i32, i32) {
    %c0_i32 = arith.constant 0 : i32
    %c0_i32_0 = arith.constant 0 : i32
    %c0_i32_1 = arith.constant 0 : i32
    return %arg0, %c0_i32, %c0_i32_0 : i32, i32, i32
  }
  func.func @transform_1(%arg0: i32) -> (i32, i32) {
    %c0_i32 = arith.constant 0 : i32
    %c0_i32_0 = arith.constant 0 : i32
    %c0_i32_1 = arith.constant 0 : i32
    return %c0_i32, %c0_i32_0 : i32, i32
  }
  func.func @transform_2(%arg0: i32) -> (i32, i32) {
    %c0_i32 = arith.constant 0 : i32
    %c0_i32_0 = arith.constant 0 : i32
    %c0_i32_1 = arith.constant 0 : i32
    return %c0_i32, %c0_i32_0 : i32, i32
  }
  func.func @transform_3(%arg0: i32) -> (i32, i32, i32) {
    %c0_i32 = arith.constant 0 : i32
    %c0_i32_0 = arith.constant 0 : i32
    %c0_i32_1 = arith.constant 0 : i32
    return %arg0, %c0_i32, %c0_i32_0 : i32, i32, i32
  }
}

</mosaic_0001>

<bundles_post_ra>
// kernel: tpu_custom_call.1
= control target key start
LH: loop header
LB: loop body
LE: loop exit
PB: predicated region body
PF: predicated region fallthrough
CT: control target
= control target key end

     0   :  { %8 = vsyncpa [#allocation3], 0  ;;  %s760_s0 = inlined_call_operand.hbm [shape: f32[2,8,32], index: 0, kind: input, shape index: {}]   ;;  %s761_s1 = inlined_call_operand.hbm [shape: bf16[32,96], index: 1, kind: input, shape index: {}]   ;;  %s762_s2 = inlined_call_operand.hbm [shape: bf16[32,32], index: 2, kind: input, shape index: {}]   ;;  %s763_s3 = inlined_call_operand.hbm [shape: f32[1,2,256], index: 3, kind: output, shape index: {}]  }
   0x1   :  { %9 = vsyncpa [#allocation6], 0  ;;  %s28_s14 = sshll.u32 %s761_s1, 4  ;;  %s29_s14 = int_to_ptr.hbm [resolvable:$true] %s28_s14 }
   0x2   :  { %10 = vsyncpa [#allocation4], 0  ;;  %s646_s15 = smov [#allocation5]   ;;  %s15_s19 = sshll.u32 %s760_s0, 4  ;;  %s16_s19 = int_to_ptr.hbm [resolvable:$true] %s15_s19 }
   0x3   :  { %s30_s16 = sshll.u32 %s646_s15, 4  ;;  %s647_s20 = smov 64   ;;  %s31_s16 = int_to_ptr.vmem [resolvable:$true] %s30_s16 }
   0x4   :  { %s648_s21 = smov 4   ;;  %s649_s22 = smov [#allocation2]  }
   0x5   :  { %36 = dma.hbm_to_vmem [thread:$0]  %s29_s14, 256, %s31_s16, [#allocation6], %s647_s20, %s647_s20, %s648_s21  }
   0x6   :  { %s17_s23 = sshll.u32 %s649_s22, 4  ;;  %s650_s24 = smov 128   ;;  %s18_s23 = int_to_ptr.vmem [resolvable:$true] %s17_s23 }
   0x7   :  { %s651_s1 = smov 8   ;;  %s41_s27 = sshll.u32 %s762_s2, 4  ;;  %s42_s27 = int_to_ptr.hbm [resolvable:$true] %s41_s27 }
   0x8   :  { %23 = dma.hbm_to_vmem [thread:$0]  %s16_s19, 256, %s18_s23, [#allocation3], %s650_s24, %s650_s24, %s651_s1  }
   0x9   :  { %s652_s28 = smov [#allocation7]  }
   0xa   :  { %s43_s29 = sshll.u32 %s652_s28, 4  ;;  %s44_s29 = int_to_ptr.vmem [resolvable:$true] %s43_s29 }
   0xb   :  { %49 = dma.hbm_to_vmem [thread:$0]  %s42_s27, 256, %s44_s29, [#allocation6], %s647_s20, %s647_s20, %s648_s21  }
   0xc   :  { %640 = dma.done.wait [#allocation3], 256  }
   0xd   :  { %641 = vsyncadd [#allocation3], 4294967040 }
   0xe   :  { %642 = dma.done.wait [#allocation6], 512  }
   0xf   :  { %643 = vsyncadd [#allocation6], 4294966784  ;;  %v508_v0 = vld [vmem:[#allocation5 + $0x8] sm:$0xff]  ;;  %v507_v1 = vld [vmem:[#allocation5] sm:$0xff]  ;;  %vm82_vm0 = vcmask 261120   ;;  %s653_s0 = smov 112  }
  0x10   :  { %92 = vmatpush.bf16.msra.mxu0 %v508_v0  ;;  %v63_v2 = vld [vmem:[#allocation2] sm:$0xff]  ;;  %v64_v3 = vld [vmem:[#allocation2 + $0x8] sm:$0xff]  ;;  %s654_s2 = smov 96   ;;  %vm116_vm1 = vcmask 130048   ;;  %vm205_vm2 = vcmask 64512   ;;  %vm259_vm3 = vcmask 1043456  }
  0x11   :  { %v65_v4 = vpack.c.bf16 %v64_v3, %v63_v2  ;;  %s655_s30 = smov 16   ;;  %s656_s4 = smov 32   ;;  %vm407_vm4 = vcmask 523264   ;;  %vm409_vm5 = vcmask 785408   ;;  %vm453_vm6 = vcmask 1040384  }
  0x12   :  { %s657_s5 = smov [#allocation8]   ;;  %s470_s9 = sshll.u32 %s763_s3, 4  ;;  %vm459_vm7 = vcmask 1041408   ;;  %s471_s9 = int_to_ptr.hbm [resolvable:$true] %s470_s9 }
  0x13   :  { %s468_s6 = sshll.u32 %s657_s5, 4  ;;  %s469_s6 = int_to_ptr.vmem [resolvable:$true] %s468_s6 }
  0x14   :  { %93 = vmatpush.bf16.msra.mxu0 %v507_v1 }
  0x17   :  { %489 = vmatmul.msk.bf16.vlgmr.msra.gmra.mxu0 %vm82_vm0, %v65_v4 }
  0x94   :  { %v95_v5 = vpop.f32.mrf.mxu0 }
  0x95   :  { %v100_v6 = vpack.c.bf16 %v95_v5, %v95_v5 }
  0x97   :  { %108 = vrot.lane.b32.xlu0 %v100_v6, %s653_s0  ;;  %v112_v11 = vunpack.c.l.b16 %v100_v6 }
  0x99   :  { %v696_v12 = vpack.c.b16 %v112_v11, %v112_v11 }
  0x9c   :  { %v97_v7 = vpop.f32.mrf.mxu0 }
  0x9d   :  { %v101_v8 = vpack.c.bf16 %v97_v7, %v97_v7 }
  0x9f   :  { %110 = vrot.lane.b32.xlu0 %v101_v8, %s653_s0  ;;  %v136_v9 = vunpack.c.l.b16 %v101_v8 }
  0xa1   :  { %v692_v10 = vpack.c.b16 %v136_v9, %v136_v9 }
  0xa3   :  { %138 = vrot.lane.b32.xlu2 %v692_v10, %s654_s2 }
  0xab   :  { %114 = vrot.lane.b32.xlu2 %v696_v12, %s654_s2 }
  0xfd   :  { %v139_v13 = vpop.permute.xlu2 %138 }
  0xfe   :  { %v144_v14 = vsel %vm116_vm1, %v139_v13, 0 }
  0xff   :  { %153 = vmatpush.bf16.xpose.msra.mxu2 %v144_v14 }
 0x105   :  { %v115_v15 = vpop.permute.xlu2 %114 }
 0x106   :  { %491 = vmatmul.msk.bf16.vlgmr.msra.gmra.mxu2 %vm116_vm1, %v101_v8  ;;  %v121_v16 = vsel %vm116_vm1, %v115_v15, 0 }
 0x107   :  { %130 = vmatpush.bf16.xpose.msra.mxu1 %v121_v16 }
 0x109   :  { %v109_v17 = vpop.permute.xlu0 %108 }
 0x10a   :  { %v159_v18 = vunpack.c.l.b16 %v109_v17 }
 0x10c   :  { %v160_v19 = vpack.c.b16 %v159_v18, %v159_v18 }
 0x10e   :  { %161 = vrot.lane.b32.xlu1 %v160_v19, %s654_s2  ;;  %490 = vmatmul.msk.bf16.vlgmr.msra.gmra.mxu1 %vm116_vm1, %v100_v6 }
 0x111   :  { %v111_v20 = vpop.permute.xlu0 %110 }
 0x112   :  { %v182_v21 = vunpack.c.l.b16 %v111_v20 }
 0x114   :  { %v183_v22 = vpack.c.b16 %v182_v21, %v182_v21 }
 0x116   :  { %184 = vrot.lane.b32.xlu1 %v183_v22, %s654_s2 }
 0x180   :  { %v162_v23 = vpop.permute.xlu1 %161 }
 0x181   :  { %v167_v24 = vsel %vm116_vm1, %v162_v23, 0 }
 0x182   :  { %176 = vmatpush.bf16.xpose.msra.mxu3 %v167_v24 }
 0x188   :  { %v185_v25 = vpop.permute.xlu1 %184 }
 0x189   :  { %v155_v26 = vpop.f32.mrf.mxu2  ;;  %492 = vmatmul.msk.bf16.vlgmr.msra.gmra.mxu3 %vm116_vm1, %v109_v17  ;;  %v190_v27 = vsel %vm116_vm1, %v185_v25, 0 }
 0x18a   :  { %199 = vmatpush.bf16.xpose.msrb.mxu0 %v190_v27  ;;  %v209_v28 = vsel %vm205_vm2, %v155_v26, -inf }
 0x18b   :  { %210 = vmax.xlane.f32.xlu2 %v209_v28  ;;  %v132_v29 = vpop.f32.mrf.mxu1 }
 0x18c   :  { %v206_v31 = vsel %vm205_vm2, %v132_v29, -inf }
 0x191   :  { %v157_v30 = vpop.f32.mrf.mxu2  ;;  %493 = vmatmul.msk.bf16.vlgmr.msrb.gmra.mxu0 %vm116_vm1, %v111_v20 }
 0x193   :  { %207 = vmax.xlane.f32.xlu2 %v206_v31  ;;  %v134_v32 = vpop.f32.mrf.mxu1 }
 0x1ab   :  { %297 = vrot.lane.b32.xlu2 %v160_v19, %s647_s20  ;;  %v510_v19 = vld [vmem:[#allocation7 + $0x8] sm:$0xff] }
 0x1fe   :  { %v211_v33 = vpop.xlane.xlu2 %210 }
 0x1ff   :  { %v219_v34 = vsub.f32 %v155_v26, %v211_v33 }
 0x201   :  { %v224_v36 = vmul.f32 1.442695, %v219_v34 }
 0x203   :  { %528 = vpow2.f32 %v224_v36 }
 0x206   :  { %v208_v35 = vpop.xlane.xlu2 %207 }
 0x207   :  { %v218_v39 = vsub.f32 %v132_v29, %v208_v35  ;;  %v509_v29 = vld [vmem:[#allocation7] sm:$0xff] }
 0x209   :  { %v222_v44 = vmul.f32 1.442695, %v218_v39  ;;  %v529_v45 = vpop.eup %528 }
 0x20a   :  { %v233_v48 = vsel %vm205_vm2, %v529_v45, 0.0 }
 0x20b   :  { %530 = vpow2.f32 %v222_v44 }
 0x20c   :  { %v178_v37 = vpop.f32.mrf.mxu3 }
 0x20d   :  { %v212_v38 = vsel %vm205_vm2, %v178_v37, -inf }
 0x20e   :  { %213 = vmax.xlane.f32.xlu0 %v212_v38  ;;  %v201_v40 = vpop.f32.mrf.mxu0  ;;  %v298_v41 = vpop.permute.xlu2 %297 }
 0x20f   :  { %v215_v42 = vsel %vm205_vm2, %v201_v40, -inf  ;;  %v303_v43 = vsel %vm259_vm3, %v298_v41, 0 }
 0x210   :  { %216 = vmax.xlane.f32.xlu1 %v215_v42  ;;  %312 = vmatpush.bf16.msrb.mxu3 %v303_v43 }
 0x211   :  { %v531_v49 = vpop.eup %530 }
 0x212   :  { %v230_v50 = vsel %vm205_vm2, %v531_v49, 0.0 }
 0x214   :  { %v180_v46 = vpop.f32.mrf.mxu3 }
 0x216   :  { %v203_v47 = vpop.f32.mrf.mxu0 }
 0x218   :  { %234 = vadd.xlane.f32.xlu1 %v233_v48 }
 0x220   :  { %231 = vadd.xlane.f32.xlu1 %v230_v50 }
 0x281   :  { %v214_v51 = vpop.xlane.xlu0 %213 }
 0x282   :  { %v220_v52 = vsub.f32 %v178_v37, %v214_v51 }
 0x283   :  { %v217_v53 = vpop.xlane.xlu1 %216 }
 0x284   :  { %v226_v54 = vmul.f32 1.442695, %v220_v52  ;;  %v221_v55 = vsub.f32 %v201_v40, %v217_v53 }
 0x286   :  { %532 = vpow2.f32 %v226_v54  ;;  %v228_v56 = vmul.f32 1.442695, %v221_v55 }
 0x288   :  { %534 = vpow2.f32 %v228_v56 }
 0x28b   :  { %v235_v61 = vpop.xlane.xlu1 %234 }
 0x28c   :  { %v533_v57 = vpop.eup %532 }
 0x28d   :  { %v236_v58 = vsel %vm205_vm2, %v533_v57, 0.0 }
 0x28e   :  { %v535_v59 = vpop.eup %534  ;;  %237 = vadd.xlane.f32.xlu0 %v236_v58 }
 0x28f   :  { %v239_v60 = vsel %vm205_vm2, %v535_v59, 0.0 }
 0x290   :  { %240 = vadd.xlane.f32.xlu1 %v239_v60 }
 0x293   :  { %v232_v62 = vpop.xlane.xlu1 %231 }
 0x2a2   :  { %318 = vrot.lane.b32.xlu0 %v183_v22, %s647_s20 }
 0x2a9   :  { %276 = vrot.lane.b32.xlu1 %v692_v10, %s647_s20 }
 0x2aa   :  { %254 = vrot.lane.b32.xlu0 %v696_v12, %s647_s20 }
 0x301   :  { %v238_v63 = vpop.xlane.xlu0 %237 }
 0x302   :  { %536 = vrcp.f32 %v238_v63 }
 0x303   :  { %v241_v0 = vpop.xlane.xlu1 %240 }
 0x304   :  { %538 = vrcp.f32 %v241_v0 }
 0x305   :  { %540 = vrcp.f32 %v235_v61 }
 0x306   :  { %542 = vrcp.f32 %v232_v62 }
 0x308   :  { %v537_v1 = vpop.eup %536 }
 0x309   :  { %v248_v2 = vmul.f32 %v537_v1, %v533_v57 }
 0x30a   :  { %v539_v4 = vpop.eup %538 }
 0x30b   :  { %v252_v3 = vpack.c.bf16 %v248_v2, %v248_v2  ;;  %v249_v5 = vmul.f32 %v539_v4, %v535_v59  ;;  %v541_v8 = vpop.eup %540 }
 0x30c   :  { %v543_v10 = vpop.eup %542  ;;  %v247_v11 = vmul.f32 %v541_v8, %v529_v45 }
 0x30d   :  { %496 = vmatmul.msk.bf16.vlgmr.msrb.gmra.mxu3 %vm205_vm2, %v252_v3  ;;  %v253_v9 = vpack.c.bf16 %v249_v5, %v249_v5  ;;  %v246_v12 = vmul.f32 %v543_v10, %v531_v49 }
 0x30e   :  { %v251_v17 = vpack.c.bf16 %v247_v11, %v247_v11 }
 0x30f   :  { %v250_v18 = vpack.c.bf16 %v246_v12, %v246_v12 }
 0x314   :  { %v319_v6 = vpop.permute.xlu0 %318 }
 0x315   :  { %v324_v7 = vsel %vm259_vm3, %v319_v6, 0 }
 0x316   :  { %333 = vmatpush.bf16.msra.mxu0 %v324_v7 }
 0x319   :  { %497 = vmatmul.msk.bf16.vlgmr.msra.gmra.mxu0 %vm205_vm2, %v253_v9 }
 0x31b   :  { %v277_v13 = vpop.permute.xlu1 %276 }
 0x31c   :  { %v255_v14 = vpop.permute.xlu0 %254  ;;  %v282_v15 = vsel %vm259_vm3, %v277_v13, 0 }
 0x31d   :  { %291 = vmatpush.bf16.msrb.mxu2 %v282_v15  ;;  %v261_v16 = vsel %vm259_vm3, %v255_v14, 0 }
 0x31e   :  { %270 = vmatpush.bf16.msrb.mxu1 %v261_v16 }
 0x320   :  { %495 = vmatmul.msk.bf16.vlgmr.msrb.gmra.mxu2 %vm205_vm2, %v251_v17 }
 0x321   :  { %494 = vmatmul.msk.bf16.vlgmr.msrb.gmra.mxu1 %vm205_vm2, %v250_v18 }
 0x322   :  { %371 = vmatpush.bf16.msra.mxu1 %v510_v19 }
 0x326   :  { %372 = vmatpush.bf16.msra.mxu1 %v509_v29 }
 0x390   :  { %v314_v20 = vpop.f32.mrf.mxu3 }
 0x396   :  { %v335_v21 = vpop.f32.mrf.mxu0 }
 0x397   :  { %v523_v22 = vpack.i.bf16 %v335_v21, %v314_v20 }
 0x398   :  { %v316_v23 = vpop.f32.mrf.mxu3 }
 0x399   :  { %524 = vrot.lane.b32.xlu2 %v523_v22, %s655_s30 }
 0x39e   :  { %v272_v24 = vpop.f32.mrf.mxu1  ;;  %v337_v25 = vpop.f32.mrf.mxu0 }
 0x3a3   :  { %v293_v26 = vpop.f32.mrf.mxu2 }
 0x3a6   :  { %v274_v27 = vpop.f32.mrf.mxu1 }
 0x3ab   :  { %v295_v28 = vpop.f32.mrf.mxu2 }
 0x3f3   :  { %v525_v30 = vpop.permute.xlu2 %524 }
 0x3f4   :  { %v527_v31 = vunpack.i.h.bf16 %v525_v30  ;;  %v526_v32 = vunpack.i.l.bf16 %v525_v30 }
 0x3f6   :  { %v348_v33 = vsel %vm116_vm1, %v293_v26, %v527_v31  ;;  %v347_v34 = vsel %vm116_vm1, %v272_v24, %v526_v32 }
 0x3f7   :  { %v349_v35 = vpack.c.bf16 %v348_v33, %v347_v34 }
 0x3f9   :  { %506 = vmatmul.msk.bf16.vlgmr.msra.gmra.mxu1 %vm82_vm0, %v349_v35 }
 0x476   :  { %v374_v36 = vpop.f32.mrf.mxu1 }
 0x477   :  { %v394_v37 = vrot.slane %v374_v36, 5  ;;  %v380_v38 = vrot.slane %v374_v36, 1  ;;  %v398_v40 = vrot.slane %v374_v36, 6  ;;  %v402_v43 = vrot.slane %v374_v36, 7 }
 0x478   :  { %v384_v44 = vrot.slane %v374_v36, 2  ;;  %v388_v48 = vrot.slane %v374_v36, 3  ;;  %v392_v60 = vrot.slane %v374_v36, 4 }
 0x479   :  { %395 = vrot.lane.b32.xlu0 %v394_v37, %s656_s4  ;;  %381 = vrot.lane.b32.xlu1 %v380_v38, %s656_s4 }
 0x47e   :  { %v376_v39 = vpop.f32.mrf.mxu1 }
 0x47f   :  { %v437_v41 = vrot.slane %v376_v39, 7  ;;  %v433_v42 = vrot.slane %v376_v39, 6  ;;  %v415_v45 = vrot.slane %v376_v39, 1  ;;  %v429_v46 = vrot.slane %v376_v39, 5 }
 0x480   :  { %v419_v47 = vrot.slane %v376_v39, 2  ;;  %v423_v49 = vrot.slane %v376_v39, 3  ;;  %v427_v58 = vrot.slane %v376_v39, 4 }
 0x481   :  { %399 = vrot.lane.b32.xlu0 %v398_v40, %s647_s20  ;;  %438 = vrot.lane.b32.xlu1 %v437_v41, %s654_s2 }
 0x482   :  { %434 = vrot.lane.b32.xlu2 %v433_v42, %s647_s20 }
 0x489   :  { %403 = vrot.lane.b32.xlu0 %v402_v43, %s654_s2  ;;  %385 = vrot.lane.b32.xlu1 %v384_v44, %s647_s20 }
 0x48a   :  { %416 = vrot.lane.b32.xlu2 %v415_v45, %s656_s4 }
 0x491   :  { %430 = vrot.lane.b32.xlu0 %v429_v46, %s656_s4 }
 0x492   :  { %420 = vrot.lane.b32.xlu2 %v419_v47, %s647_s20 }
 0x499   :  { %389 = vrot.lane.b32.xlu0 %v388_v48, %s654_s2 }
 0x49a   :  { %424 = vrot.lane.b32.xlu2 %v423_v49, %s654_s2 }
 0x4dc   :  { %v435_v50 = vpop.permute.xlu2 %434 }
 0x4e4   :  { %v417_v52 = vpop.permute.xlu2 %416 }
 0x4e5   :  { %v441_v0 = vsel %vm82_vm0, %v376_v39, %v417_v52 }
 0x4eb   :  { %v396_v51 = vpop.permute.xlu0 %395  ;;  %v382_v54 = vpop.permute.xlu1 %381 }
 0x4ec   :  { %v421_v55 = vpop.permute.xlu2 %420  ;;  %v411_v1 = vsel %vm82_vm0, %v392_v60, %v396_v51  ;;  %v406_v10 = vsel %vm82_vm0, %v374_v36, %v382_v54 }
 0x4ed   :  { %v442_v3 = vsel %vm407_vm4, %v441_v0, %v421_v55 }
 0x4f3   :  { %v400_v53 = vpop.permute.xlu0 %399  ;;  %v439_v57 = vpop.permute.xlu1 %438 }
 0x4f4   :  { %v425_v62 = vpop.permute.xlu2 %424  ;;  %v412_v4 = vsel %vm407_vm4, %v411_v1, %v400_v53 }
 0x4f5   :  { %v443_v6 = vsel %vm409_vm5, %v442_v3, %v425_v62 }
 0x4f6   :  { %v449_v11 = vrot.slane %v443_v6, 7 }
 0x4fb   :  { %v404_v56 = vpop.permute.xlu0 %403  ;;  %v386_v8 = vpop.permute.xlu1 %385 }
 0x4fc   :  { %v413_v7 = vsel %vm409_vm5, %v412_v4, %v404_v56  ;;  %v408_v12 = vsel %vm407_vm4, %v406_v10, %v386_v8 }
 0x503   :  { %v431_v59 = vpop.permute.xlu0 %430 }
 0x504   :  { %v444_v61 = vsel %vm82_vm0, %v427_v58, %v431_v59 }
 0x505   :  { %v445_v63 = vsel %vm407_vm4, %v444_v61, %v435_v50 }
 0x506   :  { %v446_v2 = vsel %vm409_vm5, %v445_v63, %v439_v57 }
 0x507   :  { %v450_v5 = vrot.slane %v446_v2, 7 }
 0x509   :  { %v455_v9 = vsel %vm453_vm6, %v413_v7, %v450_v5 }
 0x50a   :  { %v458_v15 = vrot.slane %v455_v9, 6 }
 0x50b   :  { %v390_v13 = vpop.permute.xlu0 %389 }
 0x50c   :  { %v410_v14 = vsel %vm409_vm5, %v408_v12, %v390_v13 }
 0x50d   :  { %v454_v16 = vsel %vm453_vm6, %v410_v14, %v449_v11 }
 0x50e   :  { %v460_v17 = vsel %vm459_vm7, %v454_v16, %v458_v15 }
 0x50f   :  { %462 = vst [vmem:[#allocation8] sm:$0xf] %v460_v17 }
 0x510   :  { %473 = dma.vmem_to_hbm [thread:$0]  %s469_s6, 64, %s471_s9, [#allocation4]  }
 0x511   :  { %644 = dma.done.wait [#allocation4], 64  }
 0x512   :  { %645 = vsyncadd [#allocation4], 4294967232 }
 0x513   :  { %478 = vsyncpa [#allocation3], 1 }
 0x514   :  { %479 = vsyncpa [#allocation6], 1 }
 0x515   :  { %480 = vsyncpa [#allocation4], 1 }

// kernel: tpu_custom_call.1
= control target key start
LH: loop header
LB: loop body
LE: loop exit
PB: predicated region body
PF: predicated region fallthrough
CT: control target
= control target key end

     0   :  { %8 = vsyncpa [#allocation3], 0  ;;  %s760_s0 = inlined_call_operand.hbm [shape: f32[2,8,32], index: 0, kind: input, shape index: {}]   ;;  %s761_s1 = inlined_call_operand.hbm [shape: bf16[32,96], index: 1, kind: input, shape index: {}]   ;;  %s762_s2 = inlined_call_operand.hbm [shape: bf16[32,32], index: 2, kind: input, shape index: {}]   ;;  %s763_s3 = inlined_call_operand.hbm [shape: f32[1,2,256], index: 3, kind: output, shape index: {}]  }
   0x1   :  { %9 = vsyncpa [#allocation6], 0  ;;  %s28_s14 = sshll.u32 %s761_s1, 4  ;;  %s29_s14 = int_to_ptr.hbm [resolvable:$true] %s28_s14 }
   0x2   :  { %10 = vsyncpa [#allocation4], 0  ;;  %s646_s15 = smov [#allocation5]   ;;  %s15_s19 = sshll.u32 %s760_s0, 4  ;;  %s16_s19 = int_to_ptr.hbm [resolvable:$true] %s15_s19 }
   0x3   :  { %s30_s16 = sshll.u32 %s646_s15, 4  ;;  %s647_s20 = smov 64   ;;  %s31_s16 = int_to_ptr.vmem [resolvable:$true] %s30_s16 }
   0x4   :  { %s648_s21 = smov 4   ;;  %s649_s22 = smov [#allocation2]  }
   0x5   :  { %36 = dma.hbm_to_vmem [thread:$0]  %s29_s14, 256, %s31_s16, [#allocation6], %s647_s20, %s647_s20, %s648_s21  }
   0x6   :  { %s17_s23 = sshll.u32 %s649_s22, 4  ;;  %s650_s24 = smov 128   ;;  %s18_s23 = int_to_ptr.vmem [resolvable:$true] %s17_s23 }
   0x7   :  { %s651_s1 = smov 8   ;;  %s41_s27 = sshll.u32 %s762_s2, 4  ;;  %s42_s27 = int_to_ptr.hbm [resolvable:$true] %s41_s27 }
   0x8   :  { %23 = dma.hbm_to_vmem [thread:$0]  %s16_s19, 256, %s18_s23, [#allocation3], %s650_s24, %s650_s24, %s651_s1  }
   0x9   :  { %s652_s28 = smov [#allocation7]  }
   0xa   :  { %s43_s29 = sshll.u32 %s652_s28, 4  ;;  %s44_s29 = int_to_ptr.vmem [resolvable:$true] %s43_s29 }
   0xb   :  { %49 = dma.hbm_to_vmem [thread:$0]  %s42_s27, 256, %s44_s29, [#allocation6], %s647_s20, %s647_s20, %s648_s21  }
   0xc   :  { %640 = dma.done.wait [#allocation3], 256  }
   0xd   :  { %641 = vsyncadd [#allocation3], 4294967040 }
   0xe   :  { %642 = dma.done.wait [#allocation6], 512  }
   0xf   :  { %643 = vsyncadd [#allocation6], 4294966784  ;;  %v508_v0 = vld [vmem:[#allocation5 + $0x8] sm:$0xff]  ;;  %v507_v1 = vld [vmem:[#allocation5] sm:$0xff]  ;;  %vm82_vm0 = vcmask 261120   ;;  %s653_s0 = smov 112  }
  0x10   :  { %92 = vmatpush.bf16.msra.mxu0 %v508_v0  ;;  %v63_v2 = vld [vmem:[#allocation2] sm:$0xff]  ;;  %v64_v3 = vld [vmem:[#allocation2 + $0x8] sm:$0xff]  ;;  %s654_s2 = smov 96   ;;  %vm116_vm1 = vcmask 130048   ;;  %vm205_vm2 = vcmask 64512   ;;  %vm259_vm3 = vcmask 1043456  }
  0x11   :  { %v65_v4 = vpack.c.bf16 %v64_v3, %v63_v2  ;;  %s655_s30 = smov 16   ;;  %s656_s4 = smov 32   ;;  %vm407_vm4 = vcmask 523264   ;;  %vm409_vm5 = vcmask 785408   ;;  %vm453_vm6 = vcmask 1040384  }
  0x12   :  { %s657_s5 = smov [#allocation8]   ;;  %s470_s9 = sshll.u32 %s763_s3, 4  ;;  %vm459_vm7 = vcmask 1041408   ;;  %s471_s9 = int_to_ptr.hbm [resolvable:$true] %s470_s9 }
  0x13   :  { %s468_s6 = sshll.u32 %s657_s5, 4  ;;  %s469_s6 = int_to_ptr.vmem [resolvable:$true] %s468_s6 }
  0x14   :  { %93 = vmatpush.bf16.msra.mxu0 %v507_v1 }
  0x17   :  { %489 = vmatmul.msk.bf16.vlgmr.msra.gmra.mxu0 %vm82_vm0, %v65_v4 }
  0x94   :  { %v95_v5 = vpop.f32.mrf.mxu0 }
  0x95   :  { %v100_v6 = vpack.c.bf16 %v95_v5, %v95_v5 }
  0x97   :  { %108 = vrot.lane.b32.xlu0 %v100_v6, %s653_s0  ;;  %v112_v11 = vunpack.c.l.b16 %v100_v6 }
  0x99   :  { %v696_v12 = vpack.c.b16 %v112_v11, %v112_v11 }
  0x9c   :  { %v97_v7 = vpop.f32.mrf.mxu0 }
  0x9d   :  { %v101_v8 = vpack.c.bf16 %v97_v7, %v97_v7 }
  0x9f   :  { %110 = vrot.lane.b32.xlu0 %v101_v8, %s653_s0  ;;  %v136_v9 = vunpack.c.l.b16 %v101_v8 }
  0xa1   :  { %v692_v10 = vpack.c.b16 %v136_v9, %v136_v9 }
  0xa3   :  { %138 = vrot.lane.b32.xlu2 %v692_v10, %s654_s2 }
  0xab   :  { %114 = vrot.lane.b32.xlu2 %v696_v12, %s654_s2 }
  0xfd   :  { %v139_v13 = vpop.permute.xlu2 %138 }
  0xfe   :  { %v144_v14 = vsel %vm116_vm1, %v139_v13, 0 }
  0xff   :  { %153 = vmatpush.bf16.xpose.msra.mxu2 %v144_v14 }
 0x105   :  { %v115_v15 = vpop.permute.xlu2 %114 }
 0x106   :  { %491 = vmatmul.msk.bf16.vlgmr.msra.gmra.mxu2 %vm116_vm1, %v101_v8  ;;  %v121_v16 = vsel %vm116_vm1, %v115_v15, 0 }
 0x107   :  { %130 = vmatpush.bf16.xpose.msra.mxu1 %v121_v16 }
 0x109   :  { %v109_v17 = vpop.permute.xlu0 %108 }
 0x10a   :  { %v159_v18 = vunpack.c.l.b16 %v109_v17 }
 0x10c   :  { %v160_v19 = vpack.c.b16 %v159_v18, %v159_v18 }
 0x10e   :  { %161 = vrot.lane.b32.xlu1 %v160_v19, %s654_s2  ;;  %490 = vmatmul.msk.bf16.vlgmr.msra.gmra.mxu1 %vm116_vm1, %v100_v6 }
 0x111   :  { %v111_v20 = vpop.permute.xlu0 %110 }
 0x112   :  { %v182_v21 = vunpack.c.l.b16 %v111_v20 }
 0x114   :  { %v183_v22 = vpack.c.b16 %v182_v21, %v182_v21 }
 0x116   :  { %184 = vrot.lane.b32.xlu1 %v183_v22, %s654_s2 }
 0x180   :  { %v162_v23 = vpop.permute.xlu1 %161 }
 0x181   :  { %v167_v24 = vsel %vm116_vm1, %v162_v23, 0 }
 0x182   :  { %176 = vmatpush.bf16.xpose.msra.mxu3 %v167_v24 }
 0x188   :  { %v185_v25 = vpop.permute.xlu1 %184 }
 0x189   :  { %v155_v26 = vpop.f32.mrf.mxu2  ;;  %492 = vmatmul.msk.bf16.vlgmr.msra.gmra.mxu3 %vm116_vm1, %v109_v17  ;;  %v190_v27 = vsel %vm116_vm1, %v185_v25, 0 }
 0x18a   :  { %199 = vmatpush.bf16.xpose.msrb.mxu0 %v190_v27  ;;  %v209_v28 = vsel %vm205_vm2, %v155_v26, -inf }
 0x18b   :  { %210 = vmax.xlane.f32.xlu2 %v209_v28  ;;  %v132_v29 = vpop.f32.mrf.mxu1 }
 0x18c   :  { %v206_v31 = vsel %vm205_vm2, %v132_v29, -inf }
 0x191   :  { %v157_v30 = vpop.f32.mrf.mxu2  ;;  %493 = vmatmul.msk.bf16.vlgmr.msrb.gmra.mxu0 %vm116_vm1, %v111_v20 }
 0x193   :  { %207 = vmax.xlane.f32.xlu2 %v206_v31  ;;  %v134_v32 = vpop.f32.mrf.mxu1 }
 0x1ab   :  { %297 = vrot.lane.b32.xlu2 %v160_v19, %s647_s20  ;;  %v510_v19 = vld [vmem:[#allocation7 + $0x8] sm:$0xff] }
 0x1fe   :  { %v211_v33 = vpop.xlane.xlu2 %210 }
 0x1ff   :  { %v219_v34 = vsub.f32 %v155_v26, %v211_v33 }
 0x201   :  { %v224_v36 = vmul.f32 1.442695, %v219_v34 }
 0x203   :  { %528 = vpow2.f32 %v224_v36 }
 0x206   :  { %v208_v35 = vpop.xlane.xlu2 %207 }
 0x207   :  { %v218_v39 = vsub.f32 %v132_v29, %v208_v35  ;;  %v509_v29 = vld [vmem:[#allocation7] sm:$0xff] }
 0x209   :  { %v222_v44 = vmul.f32 1.442695, %v218_v39  ;;  %v529_v45 = vpop.eup %528 }
 0x20a   :  { %v233_v48 = vsel %vm205_vm2, %v529_v45, 0.0 }
 0x20b   :  { %530 = vpow2.f32 %v222_v44 }
 0x20c   :  { %v178_v37 = vpop.f32.mrf.mxu3 }
 0x20d   :  { %v212_v38 = vsel %vm205_vm2, %v178_v37, -inf }
 0x20e   :  { %213 = vmax.xlane.f32.xlu0 %v212_v38  ;;  %v201_v40 = vpop.f32.mrf.mxu0  ;;  %v298_v41 = vpop.permute.xlu2 %297 }
 0x20f   :  { %v215_v42 = vsel %vm205_vm2, %v201_v40, -inf  ;;  %v303_v43 = vsel %vm259_vm3, %v298_v41, 0 }
 0x210   :  { %216 = vmax.xlane.f32.xlu1 %v215_v42  ;;  %312 = vmatpush.bf16.msrb.mxu3 %v303_v43 }
 0x211   :  { %v531_v49 = vpop.eup %530 }
 0x212   :  { %v230_v50 = vsel %vm205_vm2, %v531_v49, 0.0 }
 0x214   :  { %v180_v46 = vpop.f32.mrf.mxu3 }
 0x216   :  { %v203_v47 = vpop.f32.mrf.mxu0 }
 0x218   :  { %234 = vadd.xlane.f32.xlu1 %v233_v48 }
 0x220   :  { %231 = vadd.xlane.f32.xlu1 %v230_v50 }
 0x281   :  { %v214_v51 = vpop.xlane.xlu0 %213 }
 0x282   :  { %v220_v52 = vsub.f32 %v178_v37, %v214_v51 }
 0x283   :  { %v217_v53 = vpop.xlane.xlu1 %216 }
 0x284   :  { %v226_v54 = vmul.f32 1.442695, %v220_v52  ;;  %v221_v55 = vsub.f32 %v201_v40, %v217_v53 }
 0x286   :  { %532 = vpow2.f32 %v226_v54  ;;  %v228_v56 = vmul.f32 1.442695, %v221_v55 }
 0x288   :  { %534 = vpow2.f32 %v228_v56 }
 0x28b   :  { %v235_v61 = vpop.xlane.xlu1 %234 }
 0x28c   :  { %v533_v57 = vpop.eup %532 }
 0x28d   :  { %v236_v58 = vsel %vm205_vm2, %v533_v57, 0.0 }
 0x28e   :  { %v535_v59 = vpop.eup %534  ;;  %237 = vadd.xlane.f32.xlu0 %v236_v58 }
 0x28f   :  { %v239_v60 = vsel %vm205_vm2, %v535_v59, 0.0 }
 0x290   :  { %240 = vadd.xlane.f32.xlu1 %v239_v60 }
 0x293   :  { %v232_v62 = vpop.xlane.xlu1 %231 }
 0x2a2   :  { %318 = vrot.lane.b32.xlu0 %v183_v22, %s647_s20 }
 0x2a9   :  { %276 = vrot.lane.b32.xlu1 %v692_v10, %s647_s20 }
 0x2aa   :  { %254 = vrot.lane.b32.xlu0 %v696_v12, %s647_s20 }
 0x301   :  { %v238_v63 = vpop.xlane.xlu0 %237 }
 0x302   :  { %536 = vrcp.f32 %v238_v63 }
 0x303   :  { %v241_v0 = vpop.xlane.xlu1 %240 }
 0x304   :  { %538 = vrcp.f32 %v241_v0 }
 0x305   :  { %540 = vrcp.f32 %v235_v61 }
 0x306   :  { %542 = vrcp.f32 %v232_v62 }
 0x308   :  { %v537_v1 = vpop.eup %536 }
 0x309   :  { %v248_v2 = vmul.f32 %v537_v1, %v533_v57 }
 0x30a   :  { %v539_v4 = vpop.eup %538 }
 0x30b   :  { %v252_v3 = vpack.c.bf16 %v248_v2, %v248_v2  ;;  %v249_v5 = vmul.f32 %v539_v4, %v535_v59  ;;  %v541_v8 = vpop.eup %540 }
 0x30c   :  { %v543_v10 = vpop.eup %542  ;;  %v247_v11 = vmul.f32 %v541_v8, %v529_v45 }
 0x30d   :  { %496 = vmatmul.msk.bf16.vlgmr.msrb.gmra.mxu3 %vm205_vm2, %v252_v3  ;;  %v253_v9 = vpack.c.bf16 %v249_v5, %v249_v5  ;;  %v246_v12 = vmul.f32 %v543_v10, %v531_v49 }
 0x30e   :  { %v251_v17 = vpack.c.bf16 %v247_v11, %v247_v11 }
 0x30f   :  { %v250_v18 = vpack.c.bf16 %v246_v12, %v246_v12 }
 0x314   :  { %v319_v6 = vpop.permute.xlu0 %318 }
 0x315   :  { %v324_v7 = vsel %vm259_vm3, %v319_v6, 0 }
 0x316   :  { %333 = vmatpush.bf16.msra.mxu0 %v324_v7 }
 0x319   :  { %497 = vmatmul.msk.bf16.vlgmr.msra.gmra.mxu0 %vm205_vm2, %v253_v9 }
 0x31b   :  { %v277_v13 = vpop.permute.xlu1 %276 }
 0x31c   :  { %v255_v14 = vpop.permute.xlu0 %254  ;;  %v282_v15 = vsel %vm259_vm3, %v277_v13, 0 }
 0x31d   :  { %291 = vmatpush.bf16.msrb.mxu2 %v282_v15  ;;  %v261_v16 = vsel %vm259_vm3, %v255_v14, 0 }
 0x31e   :  { %270 = vmatpush.bf16.msrb.mxu1 %v261_v16 }
 0x320   :  { %495 = vmatmul.msk.bf16.vlgmr.msrb.gmra.mxu2 %vm205_vm2, %v251_v17 }
 0x321   :  { %494 = vmatmul.msk.bf16.vlgmr.msrb.gmra.mxu1 %vm205_vm2, %v250_v18 }
 0x322   :  { %371 = vmatpush.bf16.msra.mxu1 %v510_v19 }
 0x326   :  { %372 = vmatpush.bf16.msra.mxu1 %v509_v29 }
 0x390   :  { %v314_v20 = vpop.f32.mrf.mxu3 }
 0x396   :  { %v335_v21 = vpop.f32.mrf.mxu0 }
 0x397   :  { %v523_v22 = vpack.i.bf16 %v335_v21, %v314_v20 }
 0x398   :  { %v316_v23 = vpop.f32.mrf.mxu3 }
 0x399   :  { %524 = vrot.lane.b32.xlu2 %v523_v22, %s655_s30 }
 0x39e   :  { %v272_v24 = vpop.f32.mrf.mxu1  ;;  %v337_v25 = vpop.f32.mrf.mxu0 }
 0x3a3   :  { %v293_v26 = vpop.f32.mrf.mxu2 }
 0x3a6   :  { %v274_v27 = vpop.f32.mrf.mxu1 }
 0x3ab   :  { %v295_v28 = vpop.f32.mrf.mxu2 }
 0x3f3   :  { %v525_v30 = vpop.permute.xlu2 %524 }
 0x3f4   :  { %v527_v31 = vunpack.i.h.bf16 %v525_v30  ;;  %v526_v32 = vunpack.i.l.bf16 %v525_v30 }
 0x3f6   :  { %v348_v33 = vsel %vm116_vm1, %v293_v26, %v527_v31  ;;  %v347_v34 = vsel %vm116_vm1, %v272_v24, %v526_v32 }
 0x3f7   :  { %v349_v35 = vpack.c.bf16 %v348_v33, %v347_v34 }
 0x3f9   :  { %506 = vmatmul.msk.bf16.vlgmr.msra.gmra.mxu1 %vm82_vm0, %v349_v35 }
 0x476   :  { %v374_v36 = vpop.f32.mrf.mxu1 }
 0x477   :  { %v394_v37 = vrot.slane %v374_v36, 5  ;;  %v380_v38 = vrot.slane %v374_v36, 1  ;;  %v398_v40 = vrot.slane %v374_v36, 6  ;;  %v402_v43 = vrot.slane %v374_v36, 7 }
 0x478   :  { %v384_v44 = vrot.slane %v374_v36, 2  ;;  %v388_v48 = vrot.slane %v374_v36, 3  ;;  %v392_v60 = vrot.slane %v374_v36, 4 }
 0x479   :  { %395 = vrot.lane.b32.xlu0 %v394_v37, %s656_s4  ;;  %381 = vrot.lane.b32.xlu1 %v380_v38, %s656_s4 }
 0x47e   :  { %v376_v39 = vpop.f32.mrf.mxu1 }
 0x47f   :  { %v437_v41 = vrot.slane %v376_v39, 7  ;;  %v433_v42 = vrot.slane %v376_v39, 6  ;;  %v415_v45 = vrot.slane %v376_v39, 1  ;;  %v429_v46 = vrot.slane %v376_v39, 5 }
 0x480   :  { %v419_v47 = vrot.slane %v376_v39, 2  ;;  %v423_v49 = vrot.slane %v376_v39, 3  ;;  %v427_v58 = vrot.slane %v376_v39, 4 }
 0x481   :  { %399 = vrot.lane.b32.xlu0 %v398_v40, %s647_s20  ;;  %438 = vrot.lane.b32.xlu1 %v437_v41, %s654_s2 }
 0x482   :  { %434 = vrot.lane.b32.xlu2 %v433_v42, %s647_s20 }
 0x489   :  { %403 = vrot.lane.b32.xlu0 %v402_v43, %s654_s2  ;;  %385 = vrot.lane.b32.xlu1 %v384_v44, %s647_s20 }
 0x48a   :  { %416 = vrot.lane.b32.xlu2 %v415_v45, %s656_s4 }
 0x491   :  { %430 = vrot.lane.b32.xlu0 %v429_v46, %s656_s4 }
 0x492   :  { %420 = vrot.lane.b32.xlu2 %v419_v47, %s647_s20 }
 0x499   :  { %389 = vrot.lane.b32.xlu0 %v388_v48, %s654_s2 }
 0x49a   :  { %424 = vrot.lane.b32.xlu2 %v423_v49, %s654_s2 }
 0x4dc   :  { %v435_v50 = vpop.permute.xlu2 %434 }
 0x4e4   :  { %v417_v52 = vpop.permute.xlu2 %416 }
 0x4e5   :  { %v441_v0 = vsel %vm82_vm0, %v376_v39, %v417_v52 }
 0x4eb   :  { %v396_v51 = vpop.permute.xlu0 %395  ;;  %v382_v54 = vpop.permute.xlu1 %381 }
 0x4ec   :  { %v421_v55 = vpop.permute.xlu2 %420  ;;  %v411_v1 = vsel %vm82_vm0, %v392_v60, %v396_v51  ;;  %v406_v10 = vsel %vm82_vm0, %v374_v36, %v382_v54 }
 0x4ed   :  { %v442_v3 = vsel %vm407_vm4, %v441_v0, %v421_v55 }
 0x4f3   :  { %v400_v53 = vpop.permute.xlu0 %399  ;;  %v439_v57 = vpop.permute.xlu1 %438 }
 0x4f4   :  { %v425_v62 = vpop.permute.xlu2 %424  ;;  %v412_v4 = vsel %vm407_vm4, %v411_v1, %v400_v53 }
 0x4f5   :  { %v443_v6 = vsel %vm409_vm5, %v442_v3, %v425_v62 }
 0x4f6   :  { %v449_v11 = vrot.slane %v443_v6, 7 }
 0x4fb   :  { %v404_v56 = vpop.permute.xlu0 %403  ;;  %v386_v8 = vpop.permute.xlu1 %385 }
 0x4fc   :  { %v413_v7 = vsel %vm409_vm5, %v412_v4, %v404_v56  ;;  %v408_v12 = vsel %vm407_vm4, %v406_v10, %v386_v8 }
 0x503   :  { %v431_v59 = vpop.permute.xlu0 %430 }
 0x504   :  { %v444_v61 = vsel %vm82_vm0, %v427_v58, %v431_v59 }
 0x505   :  { %v445_v63 = vsel %vm407_vm4, %v444_v61, %v435_v50 }
 0x506   :  { %v446_v2 = vsel %vm409_vm5, %v445_v63, %v439_v57 }
 0x507   :  { %v450_v5 = vrot.slane %v446_v2, 7 }
 0x509   :  { %v455_v9 = vsel %vm453_vm6, %v413_v7, %v450_v5 }
 0x50a   :  { %v458_v15 = vrot.slane %v455_v9, 6 }
 0x50b   :  { %v390_v13 = vpop.permute.xlu0 %389 }
 0x50c   :  { %v410_v14 = vsel %vm409_vm5, %v408_v12, %v390_v13 }
 0x50d   :  { %v454_v16 = vsel %vm453_vm6, %v410_v14, %v449_v11 }
 0x50e   :  { %v460_v17 = vsel %vm459_vm7, %v454_v16, %v458_v15 }
 0x50f   :  { %462 = vst [vmem:[#allocation8] sm:$0xf] %v460_v17 }
 0x510   :  { %473 = dma.vmem_to_hbm [thread:$0]  %s469_s6, 64, %s471_s9, [#allocation4]  }
 0x511   :  { %644 = dma.done.wait [#allocation4], 64  }
 0x512   :  { %645 = vsyncadd [#allocation4], 4294967232 }
 0x513   :  { %478 = vsyncpa [#allocation3], 1 }
 0x514   :  { %479 = vsyncpa [#allocation6], 1 }
 0x515   :  { %480 = vsyncpa [#allocation4], 1 }

</bundles_post_ra>
